<compile_context>
chip_gen: v5e
topology: v5e:2x2
jax: 0.10.0
libtpu: 0.0.40
codegen_flags: <defaults>
</compile_context>

<pallas_src>
import jax
import jax.numpy as jnp
from jax import lax
from jax.experimental import pallas as pl
from jax.experimental.pallas import tpu as pltpu

BN_EPS = 1e-5   # nn.BatchNorm2d default eps
LN_EPS = 1e-6   # LayerNorm eps in the module
_HALO = 8       # halo rows fetched per side (>= max dilation 7, multiple of 8)


def _round_up(x, m):
    return (x + m - 1) // m * m


# ---------------------------------------------------------------------------
# Kernel A: 1x1 conv (bf16 MXU, f32 acc) + BN(eval) + ReLU (+ residual)
# ---------------------------------------------------------------------------
def _pw_kernel(x_ref, w_ref, scale_ref, shift_ref, o_ref):
    y = jnp.dot(x_ref[...].astype(jnp.bfloat16), w_ref[...],
                preferred_element_type=jnp.float32)
    y = jnp.maximum(y * scale_ref[...] + shift_ref[...], 0.0)
    o_ref[...] = y.astype(o_ref.dtype)


def _pw_res_kernel(x_ref, w_ref, scale_ref, shift_ref, res_ref, o_ref):
    y = jnp.dot(x_ref[...].astype(jnp.bfloat16), w_ref[...],
                preferred_element_type=jnp.float32)
    y = jnp.maximum(y * scale_ref[...] + shift_ref[...], 0.0)
    o_ref[...] = (y + res_ref[...].astype(jnp.float32)).astype(o_ref.dtype)


def pointwise_bn_relu(x_nhwc, w, bias, bn, residual=None, out_dtype=jnp.bfloat16):
    """relu(BN(conv1x1(x))) (+ residual); NHWC; BN in inference mode."""
    gamma, beta, mean, var = bn
    B, H, W, Cin = x_nhwc.shape
    Cout = w.shape[1]

    s = gamma / jnp.sqrt(var + BN_EPS)
    shift_v = (bias - mean) * s + beta

    # Lane-dense output: pad Cout up to a multiple of 128 (final num_class=6).
    Cp = _round_up(max(Cout, 128), 128)
    if Cp != Cout:
        w = jnp.pad(w, ((0, 0), (0, Cp - Cout)))
        s = jnp.pad(s, (0, Cp - Cout))
        shift_v = jnp.pad(shift_v, (0, Cp - Cout))
    scale = s.reshape(1, Cp).astype(jnp.float32)
    shift = shift_v.reshape(1, Cp).astype(jnp.float32)
    w_bf = w.astype(jnp.bfloat16)          # bf16 feeds the MXU, f32 accumulate

    # Row tiling: no wrapper-side padding; ragged last tile handled by Pallas.
    N = B * H * W
    tile_n = min(1024, _round_up(N, 8))
    x2 = x_nhwc.reshape(N, Cin)            # dtype cast happens in-kernel

    in_specs = [
        pl.BlockSpec((tile_n, Cin), lambda i: (i, 0)),
        pl.BlockSpec((Cin, Cp), lambda i: (0, 0)),
        pl.BlockSpec((1, Cp), lambda i: (0, 0)),
        pl.BlockSpec((1, Cp), lambda i: (0, 0)),
    ]
    args = [x2, w_bf, scale, shift]
    kernel = _pw_kernel
    if residual is not None:
        res = residual.reshape(N, Cout)
        if Cp != Cout:
            res = jnp.pad(res, ((0, 0), (0, Cp - Cout)))
        in_specs.append(pl.BlockSpec((tile_n, Cp), lambda i: (i, 0)))
        args.append(res)
        kernel = _pw_res_kernel

    out = pl.pallas_call(
        kernel,
        out_shape=jax.ShapeDtypeStruct((N, Cp), out_dtype),
        grid=(pl.cdiv(N, tile_n),),
        in_specs=in_specs,
        out_specs=pl.BlockSpec((tile_n, Cp), lambda i: (i, 0)),
        compiler_params=pltpu.CompilerParams(dimension_semantics=("parallel",)),
    )(*args)
    return out[:, :Cout].reshape(B, H, W, Cout)


# ---------------------------------------------------------------------------
# Kernel B: all four groups — channels-first LayerNorm + depthwise dilated
#           3x3 conv, row-tiled over H with an 8-row halo.
# ---------------------------------------------------------------------------
def _choose_row_tile(H, W, C4):
    """Rows per grid step (multiple of 8): keep the halo'd bf16 slab ~<=2 MiB
    and prefer >=2 row tiles so the DMA pipelines against the VALU-bound body."""
    row_bytes = W * C4 * 2
    th = ((2 * 1024 * 1024) // row_bytes - 2 * _HALO) // 8 * 8
    th = max(8, min(64, th))
    if H > 8:
        th = min(th, max(8, (H // 2) // 8 * 8))
    return min(th, max(8, _round_up(H, 8)))


def _make_groups_kernel(H, W, TH, Cg, d_list):
    def kernel(top_ref, mid_ref, bot_ref, lnw_ref, lnb_ref, dww_ref, dwb_ref, o_ref):
        t = pl.program_id(1)
        col = lax.broadcasted_iota(jnp.int32, (1, W, 1), 1)
        for g, d in enumerate(d_list):                 # static unroll, static d
            rows = TH + 2 * d
            gc = slice(g * Cg, (g + 1) * Cg)           # 128-lane-aligned slice
            # group-g slab = image rows [t*TH - d, (t+1)*TH + d), assembled from
            # the centre block and the two 8-row halo views (zero pad rows at
            # the image borders come from the wrapper-side H padding).
            xb = jnp.concatenate(
                [top_ref[0, _HALO - d:_HALO, :, gc],
                 mid_ref[0, :, :, gc],
                 bot_ref[0, 0:d, :, gc]], axis=0).astype(jnp.float32)

            # channels-first LayerNorm (per pixel over the group's channels),
            # one-pass statistics.
            mu = jnp.mean(xb, axis=-1, keepdims=True)
            var = jnp.mean(xb * xb, axis=-1, keepdims=True) - mu * mu
            xn = (xb - mu) * lax.rsqrt(var + LN_EPS) * lnw_ref[g] + lnb_ref[g]

            # rows outside the real image must stay zero for the conv
            # (LN(0)=bias otherwise); also masks the ragged last tile.
            rid = lax.broadcasted_iota(jnp.int32, (rows, 1, 1), 0) + (t * TH - d)
            xn = jnp.where((rid >= 0) & (rid < H), xn, 0.0)

            # horizontal taps: XLU roll + column mask (conv zero padding in W).
            plus = jnp.where(col < W - d, pltpu.roll(xn, W - d, axis=1), 0.0)
            minus = jnp.where(col >= d, pltpu.roll(xn, d, axis=1), 0.0)
            slabs = (minus, xn, plus)                  # kx = 0, 1, 2

            # 9 taps = leading-axis row slices; dw bias folded into tap 0.
            acc = slabs[0][0:TH] * dww_ref[g, 0] + dwb_ref[g]
            for k in range(1, 9):
                ky, kx = divmod(k, 3)
                acc = acc + slabs[kx][ky * d:ky * d + TH] * dww_ref[g, k]
            o_ref[0, :, :, gc] = acc.astype(o_ref.dtype)

    return kernel


def groups_ln_dwconv(xh, xl, params):
    """All four groups in one pallas_call, grid (B, ceil(H/TH)); writes the
    concatenated (B,H,W,4*group_size) output directly (no HBM concat)."""
    d_list = tuple(params['d_list'])
    B, H, W, Cdec = xh.shape
    gs = Cdec // 4               # xh/xl chunk channels per group
    Cg = 2 * gs                  # group_size
    C4 = 4 * Cg

    lnw = jnp.stack(params['ln_w']).astype(jnp.float32)    # (4, Cg)
    lnb = jnp.stack(params['ln_b']).astype(jnp.float32)
    dww = jnp.stack(params['dw_w']).astype(jnp.float32)    # (4, 9, Cg)
    dwb = jnp.stack(params['dw_b']).astype(jnp.float32)

    TH = _choose_row_tile(H, W, C4)
    nH = -(-H // TH)
    thb = TH // 8

    # Group-major interleave (so in-kernel channel slices are 128-lane aligned)
    # + H zero-padding: TH rows on top (keeps Blocked(TH) indexing exact),
    # ragged tail + 8 rows below.  Single wrapper pass; the zero rows double as
    # the conv's vertical zero padding.
    xg = jnp.concatenate(
        [xh.reshape(B, H, W, 4, gs), xl.reshape(B, H, W, 4, gs)], axis=-1
    ).reshape(B, H, W, C4).astype(jnp.bfloat16)
    xg = jnp.pad(xg, ((0, 0), (TH, nH * TH - H + _HALO), (0, 0), (0, 0)))

    # VMEM limit derived from actual block sizes (capped well under v7x's
    # 64 MiB physical VMEM).
    slab_bytes = (TH + 2 * _HALO) * W * C4 * 2
    grp_bytes = (TH + 14) * W * Cg * 4
    vmem_limit = int(min(max(3 * slab_bytes + 2 * TH * W * C4 * 2
                             + 5 * grp_bytes + (2 << 20), 16 << 20), 32 << 20))

    kernel = _make_groups_kernel(H, W, TH, Cg, d_list)
    return pl.pallas_call(
        kernel,
        out_shape=jax.ShapeDtypeStruct((B, H, W, C4), jnp.bfloat16),
        grid=(B, nH),
        in_specs=[
            # top halo: padded rows [(t+1)*TH - 8, (t+1)*TH)
            pl.BlockSpec((1, _HALO, W, C4), lambda b, t: (b, (t + 1) * thb - 1, 0, 0)),
            # centre: padded rows [(t+1)*TH, (t+2)*TH)  == image rows [t*TH, (t+1)*TH)
            pl.BlockSpec((1, TH, W, C4), lambda b, t: (b, t + 1, 0, 0)),
            # bottom halo: padded rows [(t+2)*TH, (t+2)*TH + 8)
            pl.BlockSpec((1, _HALO, W, C4), lambda b, t: (b, (t + 2) * thb, 0, 0)),
            pl.BlockSpec((4, Cg), lambda b, t: (0, 0)),            # ln weight
            pl.BlockSpec((4, Cg), lambda b, t: (0, 0)),            # ln bias
            pl.BlockSpec((4, 9, Cg), lambda b, t: (0, 0, 0)),      # dw weights
            pl.BlockSpec((4, Cg), lambda b, t: (0, 0)),            # dw bias
        ],
        out_specs=pl.BlockSpec((1, TH, W, C4), lambda b, t: (b, t, 0, 0)),
        compiler_params=pltpu.CompilerParams(
            dimension_semantics=("parallel", "parallel"),
            vmem_limit_bytes=vmem_limit),
    )(xg, xg, xg, lnw, lnb, dww, dwb)


# ---------------------------------------------------------------------------
# Bilinear upsampling (align_corners=True), exact gather + lerp — JAX glue
# ---------------------------------------------------------------------------
def upsample_bilinear(x_nhwc, scale):
    # == nn.Upsample(scale_factor=scale, mode='bilinear', align_corners=True)
    B, H, W, C = x_nhwc.shape

    def idx(n_in, n_out):
        if n_in == 1:
            z = jnp.zeros((n_out,), jnp.int32)
            return z, z, jnp.zeros((n_out,), jnp.float32)
        src = jnp.arange(n_out, dtype=jnp.float32) * ((n_in - 1) / (n_out - 1))
        i0 = jnp.clip(jnp.floor(src).astype(jnp.int32), 0, n_in - 2)
        return i0, i0 + 1, src - i0.astype(jnp.float32)

    h0, h1, fh = idx(H, H * scale)
    w0, w1, fw = idx(W, W * scale)
    fh = fh[None, :, None, None]
    fw = fw[None, None, :, None]
    xf = x_nhwc.astype(jnp.float32)
    xr = jnp.take(xf, h0, axis=1) * (1.0 - fh) + jnp.take(xf, h1, axis=1) * fh
    y = jnp.take(xr, w0, axis=2) * (1.0 - fw) + jnp.take(xr, w1, axis=2) * fw
    return y.astype(x_nhwc.dtype)


# ---------------------------------------------------------------------------
# Full Groupfusing forward (shared structure for kernel path and reference)
# ---------------------------------------------------------------------------
def _forward(params, out_encoder, pw_fn, groups_fn):
    e0, e1, e2, e3 = [jnp.transpose(e, (0, 2, 3, 1)) for e in out_encoder]  # NHWC
    bn = (params['bn_g'], params['bn_b'], params['bn_m'], params['bn_v'])
    bn1 = (params['bn1_g'], params['bn1_b'], params['bn1_m'], params['bn1_v'])

    x3 = upsample_bilinear(e3, 2)                               # f32 residual
    x2 = pw_fn(e2, params['w3'], params['b3'], bn, x3)          # bf16 activations
    xh = upsample_bilinear(x2, 4)
    x1 = pw_fn(e1, params['w2'], params['b2'], bn, None)
    xl = pw_fn(e0, params['w1'], params['b1'], bn, upsample_bilinear(x1, 2))

    x = groups_fn(xh, xl, params)                               # (B,H,W,4*group_size)
    x = pw_fn(x, params['w_out'], params['b_out'], bn1, None, out_dtype=jnp.float32)
    x = upsample_bilinear(x, 4)
    return jnp.transpose(x, (0, 3, 1, 2))                       # NCHW, f32


def groupfusing_forward(params, out_encoder):
    return _forward(params, out_encoder, pointwise_bn_relu, groups_ln_dwconv)


# ------------------------- pure-JAX f32 reference ---------------------------
def _ref_pw(x, w, b, bn, res=None, out_dtype=None):
    g, be, m, v = bn
    y = jnp.einsum('bhwc,cd->bhwd', x, w, precision=lax.Precision.HIGHEST) + b
    y = (y - m) / jnp.sqrt(v + BN_EPS) * g + be
    y = jnp.maximum(y, 0.0)
    return y if res is None else y + res


def _ref_group_single(x, ln_w, ln_b, dw_w, dw_b, d):
    mu = jnp.mean(x, axis=-1, keepdims=True)
    var = jnp.mean((x - mu) ** 2, axis=-1, keepdims=True)
    xn = (x - mu) / jnp.sqrt(var + LN_EPS) * ln_w + ln_b
    C = x.shape[-1]
    rhs = dw_w.reshape(3, 3, 1, C)                              # HWIO, I=1
    y = lax.conv_general_dilated(
        xn, rhs, window_strides=(1, 1), padding=((d, d), (d, d)),
        rhs_dilation=(d, d), dimension_numbers=('NHWC', 'HWIO', 'NHWC'),
        feature_group_count=C, precision=lax.Precision.HIGHEST)
    return y + dw_b


def _ref_groups(xh, xl, params):
    gs = xh.shape[-1] // 4
    outs = []
    for g, d in enumerate(params['d_list']):
        xi = jnp.concatenate([xh[..., g * gs:(g + 1) * gs],
                              xl[..., g * gs:(g + 1) * gs]], axis=-1)
        outs.append(_ref_group_single(xi, params['ln_w'][g], params['ln_b'][g],
                                      params['dw_w'][g], params['dw_b'][g], d))
    return jnp.concatenate(outs, axis=-1)


def ref_forward(params, out_encoder):
    return _forward(params, out_encoder, _ref_pw, _ref_groups)


# ---------------------------------------------------------------------------
if __name__ == "__main__":
    B, Hb, Wb = 2, 16, 16
    dims = [32, 64, 128, 256]           # dim_out_encoder
    decoder_dim = 256
    num_class = 6
    d_list = [1, 2, 5, 7]
    gsz = decoder_dim // 2              # group_size = 128

    keys = iter(jax.random.split(jax.random.PRNGKey(0), 64))
    nk = lambda: next(keys)
    nrm = lambda shape, s=0.1: s * jax.random.normal(nk(), shape, jnp.float32)

    params = dict(
        d_list=d_list,
        w1=nrm((dims[0], decoder_dim)), b1=nrm((decoder_dim,)),
        w2=nrm((dims[1], decoder_dim)), b2=nrm((decoder_dim,)),
        w3=nrm((dims[2], decoder_dim)), b3=nrm((decoder_dim,)),
        w_out=nrm((decoder_dim * 2, num_class)), b_out=nrm((num_class,)),
        bn_g=1.0 + nrm((decoder_dim,)), bn_b=nrm((decoder_dim,)),
        bn_m=nrm((decoder_dim,)), bn_v=0.5 + jnp.abs(nrm((decoder_dim,))),
        bn1_g=1.0 + nrm((num_class,)), bn1_b=nrm((num_class,)),
        bn1_m=nrm((num_class,)), bn1_v=0.5 + jnp.abs(nrm((num_class,))),
        ln_w=[1.0 + nrm((gsz,)) for _ in range(4)],
        ln_b=[nrm((gsz,)) for _ in range(4)],
        dw_w=[nrm((9, gsz), 0.3) for _ in range(4)],   # dw_w[ky*3+kx, c]
        dw_b=[nrm((gsz,)) for _ in range(4)],
    )

    # out_encoder feature pyramid (NCHW, PyTorch convention)
    out_encoder = [
        jax.random.normal(nk(), (B, dims[0], Hb, Wb), jnp.float32),
        jax.random.normal(nk(), (B, dims[1], Hb // 2, Wb // 2), jnp.float32),
        jax.random.normal(nk(), (B, dims[2], Hb // 4, Wb // 4), jnp.float32),
        jax.random.normal(nk(), (B, dims[3], Hb // 8, Wb // 8), jnp.float32),
    ]

    out = jax.block_until_ready(groupfusing_forward(params, out_encoder))
    assert out.shape == (B, num_class, Hb * 4, Wb * 4), out.shape

    ref = jax.block_until_ready(ref_forward(params, out_encoder))
    err = float(jnp.max(jnp.abs(out.astype(jnp.float32) - ref)))
    scale = float(jnp.max(jnp.abs(ref))) + 1e-6
    assert err < 1e-2 * scale + 1e-4, f"mismatch: max|diff|={err}, max|ref|={scale}"

    print("KERNEL_OK")
</pallas_src>

<mosaic_0001>
module attributes {stable_mosaic.version = 11 : i64} {
  func.func @_pw_res_kernel(%arg0: i32, %arg1: memref<32x128xf32, #tpu.memory_space<vmem>>, %arg2: memref<128x256xbf16, #tpu.memory_space<vmem>>, %arg3: memref<1x256xf32, #tpu.memory_space<vmem>>, %arg4: memref<1x256xf32, #tpu.memory_space<vmem>>, %arg5: memref<32x256xf32, #tpu.memory_space<vmem>>, %arg6: memref<32x256xbf16, #tpu.memory_space<vmem>>) attributes {dimension_semantics = [#tpu.dimension_semantics<parallel>], iteration_bounds = array<i64: 1>, scalar_prefetch = 0 : i64, scratch_operands = 0 : i64, tpu.core_type = #tpu.core_type<tc>, window_params = [{transform_indices = @transform_0, window_bounds = array<i64: 32, 128>}, {pipeline_mode = #tpu.pipeline_mode<synchronous>, transform_indices = @transform_1, window_bounds = array<i64: 128, 256>}, {pipeline_mode = #tpu.pipeline_mode<synchronous>, transform_indices = @transform_2, window_bounds = array<i64: 1, 256>}, {pipeline_mode = #tpu.pipeline_mode<synchronous>, transform_indices = @transform_3, window_bounds = array<i64: 1, 256>}, {transform_indices = @transform_4, window_bounds = array<i64: 32, 256>}, {transform_indices = @transform_5, window_bounds = array<i64: 32, 256>}]} {
    %c0 = arith.constant 0 : index
    %c0_0 = arith.constant 0 : index
    %0 = vector.load %arg1[%c0, %c0_0] : memref<32x128xf32, #tpu.memory_space<vmem>>, vector<32x128xf32>
    %1 = arith.truncf %0 : vector<32x128xf32> to vector<32x128xbf16>
    %c0_1 = arith.constant 0 : index
    %c0_2 = arith.constant 0 : index
    %2 = vector.load %arg2[%c0_1, %c0_2] : memref<128x256xbf16, #tpu.memory_space<vmem>>, vector<128x256xbf16>
    %cst = arith.constant dense<0.000000e+00> : vector<32x256xf32>
    %3 = tpu.matmul %1, %2, %cst {dimension_numbers = #tpu.dot_dimension_numbers<[1], [0], [0], [1], [0, 0, 1, 1], [], []>} : vector<32x128xbf16>, vector<128x256xbf16>, vector<32x256xf32> -> vector<32x256xf32>
    %c0_3 = arith.constant 0 : index
    %c0_4 = arith.constant 0 : index
    %4 = vector.load %arg3[%c0_3, %c0_4] : memref<1x256xf32, #tpu.memory_space<vmem>>, vector<1x256xf32>
    %5 = vector.broadcast %4 : vector<1x256xf32> to vector<32x256xf32>
    %6 = arith.mulf %3, %5 : vector<32x256xf32>
    %c0_5 = arith.constant 0 : index
    %c0_6 = arith.constant 0 : index
    %7 = vector.load %arg4[%c0_5, %c0_6] : memref<1x256xf32, #tpu.memory_space<vmem>>, vector<1x256xf32>
    %8 = vector.broadcast %7 : vector<1x256xf32> to vector<32x256xf32>
    %9 = arith.addf %6, %8 : vector<32x256xf32>
    %cst_7 = arith.constant 0.000000e+00 : f32
    %10 = vector.broadcast %cst_7 : f32 to vector<32x256xf32>
    %11 = arith.maximumf %9, %10 : vector<32x256xf32>
    %c0_8 = arith.constant 0 : index
    %c0_9 = arith.constant 0 : index
    %12 = vector.load %arg5[%c0_8, %c0_9] : memref<32x256xf32, #tpu.memory_space<vmem>>, vector<32x256xf32>
    %13 = arith.addf %11, %12 : vector<32x256xf32>
    %14 = arith.truncf %13 : vector<32x256xf32> to vector<32x256xbf16>
    %c0_10 = arith.constant 0 : index
    %c0_11 = arith.constant 0 : index
    %15 = vector.load %arg6[%c0_10, %c0_11] : memref<32x256xbf16, #tpu.memory_space<vmem>>, vector<32x256xbf16>
    tpu.vector_store %arg6[%c0_10, %c0_11], %14 {strides = array<i32>} : memref<32x256xbf16, #tpu.memory_space<vmem>>, vector<32x256xbf16>,
    return
  }
  func.func @transform_0(%arg0: i32) -> (i32, i32) {
    %c0_i32 = arith.constant 0 : i32
    %c0_i32_0 = arith.constant 0 : i32
    return %arg0, %c0_i32 : i32, i32
  }
  func.func @transform_1(%arg0: i32) -> (i32, i32) {
    %c0_i32 = arith.constant 0 : i32
    %c0_i32_0 = arith.constant 0 : i32
    %c0_i32_1 = arith.constant 0 : i32
    return %c0_i32, %c0_i32_0 : i32, i32
  }
  func.func @transform_2(%arg0: i32) -> (i32, i32) {
    %c0_i32 = arith.constant 0 : i32
    %c0_i32_0 = arith.constant 0 : i32
    %c0_i32_1 = arith.constant 0 : i32
    return %c0_i32, %c0_i32_0 : i32, i32
  }
  func.func @transform_3(%arg0: i32) -> (i32, i32) {
    %c0_i32 = arith.constant 0 : i32
    %c0_i32_0 = arith.constant 0 : i32
    %c0_i32_1 = arith.constant 0 : i32
    return %c0_i32, %c0_i32_0 : i32, i32
  }
  func.func @transform_4(%arg0: i32) -> (i32, i32) {
    %c0_i32 = arith.constant 0 : i32
    %c0_i32_0 = arith.constant 0 : i32
    return %arg0, %c0_i32 : i32, i32
  }
  func.func @transform_5(%arg0: i32) -> (i32, i32) {
    %c0_i32 = arith.constant 0 : i32
    %c0_i32_0 = arith.constant 0 : i32
    return %arg0, %c0_i32 : i32, i32
  }
}

</mosaic_0001>

<bundles_post_ra>
// kernel: tpu_custom_call.1
= control target key start
LH: loop header
LB: loop body
LE: loop exit
PB: predicated region body
PF: predicated region fallthrough
CT: control target
= control target key end

     0   :  { %10 = vsyncpa [#allocation3], 0  ;;  %s602_s0 = inlined_call_operand.hbm [shape: f32[32,128], index: 0, kind: input, shape index: {}]   ;;  %s603_s1 = inlined_call_operand.hbm [shape: bf16[128,256], index: 1, kind: input, shape index: {}]   ;;  %s604_s2 = inlined_call_operand.hbm [shape: f32[1,256], index: 2, kind: input, shape index: {}]   ;;  %s605_s3 = inlined_call_operand.vmem [shape: f32[1,256], index: 3, kind: input, shape index: {}]   ;;  %s606_s4 = inlined_call_operand.hbm [shape: f32[32,256], index: 4, kind: input, shape index: {}]   ;;  %s607_s5 = inlined_call_operand.hbm [shape: bf16[32,256], index: 5, kind: output, shape index: {}]  }
   0x1   :  { %11 = vsyncpa [#allocation6], 0 }
   0x2   :  { %12 = vsyncpa [#allocation9], 0 }
   0x3   :  { %13 = vsyncpa [#allocation4], 0  ;;  %s31_s20 = sshll.u32 %s603_s1, 4  ;;  %s536_s21 = smov [#allocation5]   ;;  %s32_s20 = int_to_ptr.hbm [resolvable:$true] %s31_s20 }
   0x4   :  { %s33_s22 = sshll.u32 %s536_s21, 4  ;;  %s18_s25 = sshll.u32 %s602_s0, 4  ;;  %s34_s22 = int_to_ptr.vmem [resolvable:$true] %s33_s22  ;;  %s19_s25 = int_to_ptr.hbm [resolvable:$true] %s18_s25 }
   0x5   :  { %s537_s26 = smov 128   ;;  %s538_s27 = smov 8  }
   0x6   :  { %39 = dma.hbm_to_vmem [thread:$0]  %s32_s20, 2048, %s34_s22, [#allocation6], %s537_s26, %s537_s26, %s538_s27  }
   0x7   :  { %s539_s28 = smov [#allocation2]   ;;  %s45_s1 = sshll.u32 %s604_s2, 4  ;;  %s46_s1 = int_to_ptr.hbm [resolvable:$true] %s45_s1 }
   0x8   :  { %s20_s29 = sshll.u32 %s539_s28, 4  ;;  %s57_s8 = sshll.u32 %s606_s4, 4  ;;  %s21_s29 = int_to_ptr.vmem [resolvable:$true] %s20_s29  ;;  %s58_s8 = int_to_ptr.hbm [resolvable:$true] %s57_s8 }
   0x9   :  { %26 = dma.hbm_to_vmem [thread:$0]  %s19_s25, 512, %s21_s29, [#allocation3], %s537_s26, %s537_s26, %s538_s27  }
   0xa   :  { %s540_s9 = smov [#allocation7]   ;;  %s541_s11 = smov [#allocation8]  }
   0xb   :  { %s47_s10 = sshll.u32 %s540_s9, 4  ;;  %s59_s12 = sshll.u32 %s541_s11, 4  ;;  %s48_s10 = int_to_ptr.vmem [resolvable:$true] %s47_s10  ;;  %s60_s12 = int_to_ptr.vmem [resolvable:$true] %s59_s12 }
   0xc   :  { %50 = dma.hbm_to_vmem [thread:$0]  %s46_s1, 32, %s48_s10, [#allocation6]  }
   0xd   :  { %s542_s13 = smov 256   ;;  %s543_s2 = smov 16  }
   0xe   :  { %65 = dma.hbm_to_vmem [thread:$0]  %s58_s8, 1024, %s60_s12, [#allocation9], %s542_s13, %s542_s13, %s543_s2  }
   0xf   :  { %528 = dma.done.wait [#allocation3], 512  }
  0x10   :  { %529 = vsyncadd [#allocation3], 4294966784 }
  0x11   :  { %530 = dma.done.wait [#allocation6], 2080  }
  0x12   :  { %531 = vsyncadd [#allocation6], 4294965216 }
  0x13   :  { %532 = dma.done.wait [#allocation9], 1024  }
  0x14   :  { %533 = vsyncadd [#allocation9], 4294966272  ;;  %v361_v0 = vld [vmem:[#allocation5 + $0x70] sm:$0xf]  ;;  %v382_v1 = vld [vmem:[#allocation5 + $0x74] sm:$0xf0] }
  0x15   :  { %v381_v2 = vld [vmem:[#allocation5 + $0x74] sm:$0xf]  ;;  %v362_v3 = vor.u32 %v382_v1, %v361_v0  ;;  %v363_v4 = vld [vmem:[#allocation5 + $0x78] sm:$0xf0]  ;;  %v353_v5 = vld [vmem:[#allocation5 + $0x60] sm:$0xf] }
  0x16   :  { %v380_v6 = vld [vmem:[#allocation5 + $0x64] sm:$0xf0]  ;;  %v366_v7 = vor.u32 %v381_v2, %v363_v4  ;;  %v379_v8 = vld [vmem:[#allocation5 + $0x64] sm:$0xf]  ;;  %v355_v9 = vld [vmem:[#allocation5 + $0x68] sm:$0xf0] }
  0x17   :  { %184 = vmatpush.bf16.msra.mxu0 %v362_v3  ;;  %383 = vmatpush.bf16.msra.mxu2 %v362_v3  ;;  %v354_v10 = vor.u32 %v380_v6, %v353_v5  ;;  %v358_v11 = vor.u32 %v379_v8, %v355_v9  ;;  %v345_v12 = vld [vmem:[#allocation5 + $0x50] sm:$0xf]  ;;  %v378_v13 = vld [vmem:[#allocation5 + $0x54] sm:$0xf0]  ;;  %v377_v14 = vld [vmem:[#allocation5 + $0x54] sm:$0xf] }
  0x18   :  { %203 = vmatpush.bf16.msra.mxu1 %v366_v7  ;;  %391 = vmatpush.bf16.msra.mxu3 %v366_v7  ;;  %v347_v15 = vld [vmem:[#allocation5 + $0x58] sm:$0xf0]  ;;  %v346_v16 = vor.u32 %v378_v13, %v345_v12  ;;  %v337_v18 = vld [vmem:[#allocation5 + $0x40] sm:$0xf]  ;;  %v376_v19 = vld [vmem:[#allocation5 + $0x44] sm:$0xf0] }
  0x19   :  { %v350_v17 = vor.u32 %v377_v14, %v347_v15  ;;  %v375_v20 = vld [vmem:[#allocation5 + $0x44] sm:$0xf]  ;;  %v339_v21 = vld [vmem:[#allocation5 + $0x48] sm:$0xf0]  ;;  %v338_v22 = vor.u32 %v376_v19, %v337_v18  ;;  %v329_v24 = vld [vmem:[#allocation5 + $0x30] sm:$0xf] }
  0x1a   :  { %v342_v23 = vor.u32 %v375_v20, %v339_v21  ;;  %v374_v25 = vld [vmem:[#allocation5 + $0x34] sm:$0xf0]  ;;  %v373_v26 = vld [vmem:[#allocation5 + $0x34] sm:$0xf]  ;;  %v331_v27 = vld [vmem:[#allocation5 + $0x38] sm:$0xf0] }
  0x1b   :  { %185 = vmatpush.bf16.msra.mxu0 %v354_v10  ;;  %384 = vmatpush.bf16.msra.mxu2 %v354_v10  ;;  %v330_v28 = vor.u32 %v374_v25, %v329_v24  ;;  %v334_v29 = vor.u32 %v373_v26, %v331_v27  ;;  %v321_v30 = vld [vmem:[#allocation5 + $0x20] sm:$0xf]  ;;  %v372_v31 = vld [vmem:[#allocation5 + $0x24] sm:$0xf0]  ;;  %v371_v32 = vld [vmem:[#allocation5 + $0x24] sm:$0xf] }
  0x1c   :  { %204 = vmatpush.bf16.msra.mxu1 %v358_v11  ;;  %392 = vmatpush.bf16.msra.mxu3 %v358_v11  ;;  %v323_v33 = vld [vmem:[#allocation5 + $0x28] sm:$0xf0]  ;;  %v322_v34 = vor.u32 %v372_v31, %v321_v30  ;;  %v313_v36 = vld [vmem:[#allocation5 + $0x10] sm:$0xf]  ;;  %v370_v37 = vld [vmem:[#allocation5 + $0x14] sm:$0xf0] }
  0x1d   :  { %v326_v35 = vor.u32 %v371_v32, %v323_v33  ;;  %v369_v38 = vld [vmem:[#allocation5 + $0x14] sm:$0xf]  ;;  %v315_v39 = vld [vmem:[#allocation5 + $0x18] sm:$0xf0]  ;;  %v314_v40 = vor.u32 %v370_v37, %v313_v36  ;;  %v305_v42 = vld [vmem:[#allocation5] sm:$0xf] }
  0x1e   :  { %v318_v41 = vor.u32 %v369_v38, %v315_v39  ;;  %v368_v43 = vld [vmem:[#allocation5 + $0x4] sm:$0xf0]  ;;  %v367_v44 = vld [vmem:[#allocation5 + $0x4] sm:$0xf]  ;;  %v307_v45 = vld [vmem:[#allocation5 + $0x8] sm:$0xf0] }
  0x1f   :  { %186 = vmatpush.bf16.msra.mxu0 %v346_v16  ;;  %385 = vmatpush.bf16.msra.mxu2 %v346_v16  ;;  %v82_v46 = vld [vmem:[#allocation2] sm:$0xff]  ;;  %v306_v47 = vor.u32 %v368_v43, %v305_v42  ;;  %v83_v48 = vld [vmem:[#allocation2 + $0x8] sm:$0xff]  ;;  %v84_v49 = vld [vmem:[#allocation2 + $0x10] sm:$0xff]  ;;  %v310_v51 = vor.u32 %v367_v44, %v307_v45  ;;  %s288_s18 = sshll.u32 %s607_s5, 4  ;;  %s289_s18 = int_to_ptr.hbm [resolvable:$true] %s288_s18 }
  0x20   :  { %205 = vmatpush.bf16.msra.mxu1 %v350_v17  ;;  %393 = vmatpush.bf16.msra.mxu3 %v350_v17  ;;  %v85_v50 = vld [vmem:[#allocation2 + $0x18] sm:$0xff]  ;;  %v86_v52 = vpack.c.bf16 %v83_v48, %v82_v46  ;;  %v222_v54 = vld [vmem:[#allocation7] sm:$0x3]  ;;  %v258_v1 = vld [vmem:[#allocation8] sm:$0xff] }
  0x21   :  { %v87_v53 = vpack.c.bf16 %v85_v50, %v84_v49  ;;  %v236_v55 = vld [vmem:[%s605_s3] sm:$0x3]  ;;  %v224_v56 = vperm.slane %v222_v54, 0  ;;  %v225_v57 = vperm.slane %v222_v54, 1  ;;  %v259_v4 = vld [vmem:[#allocation8 + $0x8] sm:$0xff]  ;;  %v262_v17 = vld [vmem:[#allocation8 + $0x20] sm:$0xff] }
  0x22   :  { %v238_v58 = vperm.slane %v236_v55, 0  ;;  %v239_v60 = vperm.slane %v236_v55, 1  ;;  %v263_v21 = vld [vmem:[#allocation8 + $0x28] sm:$0xff]  ;;  %v260_v24 = vld [vmem:[#allocation8 + $0x10] sm:$0xff]  ;;  %v265_v43 = vld [vmem:[#allocation8 + $0x38] sm:$0xff]  ;;  %s544_s3 = smov [#allocation10]  }
  0x23   :  { %187 = vmatpush.bf16.msra.mxu0 %v338_v22  ;;  %386 = vmatpush.bf16.msra.mxu2 %v338_v22  ;;  %s286_s15 = sshll.u32 %s544_s3, 4  ;;  %s287_s15 = int_to_ptr.vmem [resolvable:$true] %s286_s15 }
  0x24   :  { %206 = vmatpush.bf16.msra.mxu1 %v342_v23  ;;  %394 = vmatpush.bf16.msra.mxu3 %v342_v23 }
  0x27   :  { %188 = vmatpush.bf16.msra.mxu0 %v330_v28  ;;  %387 = vmatpush.bf16.msra.mxu2 %v330_v28  ;;  %v261_v28 = vld [vmem:[#allocation8 + $0x18] sm:$0xff] }
  0x28   :  { %207 = vmatpush.bf16.msra.mxu1 %v334_v29  ;;  %395 = vmatpush.bf16.msra.mxu3 %v334_v29 }
  0x2b   :  { %189 = vmatpush.bf16.msra.mxu0 %v322_v34  ;;  %388 = vmatpush.bf16.msra.mxu2 %v322_v34 }
  0x2c   :  { %208 = vmatpush.bf16.msra.mxu1 %v326_v35  ;;  %396 = vmatpush.bf16.msra.mxu3 %v326_v35 }
  0x2f   :  { %190 = vmatpush.bf16.msra.mxu0 %v314_v40  ;;  %389 = vmatpush.bf16.msra.mxu2 %v314_v40  ;;  %v264_v40 = vld [vmem:[#allocation8 + $0x30] sm:$0xff] }
  0x30   :  { %209 = vmatpush.bf16.msra.mxu1 %v318_v41  ;;  %397 = vmatpush.bf16.msra.mxu3 %v318_v41 }
  0x33   :  { %191 = vmatpush.bf16.msra.mxu0 %v306_v47  ;;  %390 = vmatpush.bf16.msra.mxu2 %v306_v47 }
  0x34   :  { %210 = vmatpush.bf16.msra.mxu1 %v310_v51  ;;  %398 = vmatpush.bf16.msra.mxu3 %v310_v51 }
  0x36   :  { %192 = vmatmul.bf16.vlgmr.msra.gmra.mxu0 %v86_v52  ;;  %197 = vmatmul.bf16.vlgmr.msra.gmra.mxu2 %v87_v53 }
  0x37   :  { %211 = vmatmul.bf16.vlgmr.msra.gmra.mxu1 %v86_v52  ;;  %216 = vmatmul.bf16.vlgmr.msra.gmra.mxu3 %v87_v53 }
  0xb3   :  { %v193_v59 = vpop.f32.mrf.mxu0 }
  0xb4   :  { %v228_v61 = vmul.f32 %v224_v56, %v193_v59  ;;  %v212_v62 = vpop.f32.mrf.mxu1 }
  0xb5   :  { %v229_v63 = vmul.f32 %v225_v57, %v212_v62 }
  0xb6   :  { %v242_v0 = vadd.f32 %v238_v58, %v228_v61 }
  0xb7   :  { %v243_v2 = vadd.f32 %v239_v60, %v229_v63 }
  0xb8   :  { %v250_v3 = vmax.f32 %v242_v0, 0.0 }
  0xb9   :  { %v251_v5 = vmax.f32 %v243_v2, 0.0  ;;  %v198_v6 = vpop.f32.mrf.mxu2 }
  0xba   :  { %v266_v7 = vadd.f32 %v258_v1, %v250_v3  ;;  %v232_v8 = vmul.f32 %v224_v56, %v198_v6  ;;  %v217_v9 = vpop.f32.mrf.mxu3 }
  0xbb   :  { %v267_v10 = vadd.f32 %v259_v4, %v251_v5  ;;  %v233_v11 = vmul.f32 %v225_v57, %v217_v9  ;;  %v195_v12 = vpop.f32.mrf.mxu0 }
  0xbc   :  { %v246_v13 = vadd.f32 %v238_v58, %v232_v8  ;;  %v230_v14 = vmul.f32 %v224_v56, %v195_v12  ;;  %v214_v15 = vpop.f32.mrf.mxu1 }
  0xbd   :  { %v274_v16 = vpack.c.bf16 %v267_v10, %v266_v7  ;;  %v247_v18 = vadd.f32 %v239_v60, %v233_v11  ;;  %v231_v19 = vmul.f32 %v225_v57, %v214_v15 }
  0xbe   :  { %v254_v20 = vmax.f32 %v246_v13, 0.0  ;;  %v244_v22 = vadd.f32 %v238_v58, %v230_v14 }
  0xbf   :  { %278 = vst [vmem:[#allocation10] sm:$0xff] %v274_v16  ;;  %v255_v23 = vmax.f32 %v247_v18, 0.0  ;;  %v245_v25 = vadd.f32 %v239_v60, %v231_v19 }
  0xc0   :  { %v270_v26 = vadd.f32 %v262_v17, %v254_v20  ;;  %v252_v27 = vmax.f32 %v244_v22, 0.0 }
  0xc1   :  { %v271_v29 = vadd.f32 %v263_v21, %v255_v23  ;;  %v253_v30 = vmax.f32 %v245_v25, 0.0  ;;  %v200_v31 = vpop.f32.mrf.mxu2 }
  0xc2   :  { %v268_v32 = vadd.f32 %v260_v24, %v252_v27  ;;  %v234_v33 = vmul.f32 %v224_v56, %v200_v31  ;;  %v219_v34 = vpop.f32.mrf.mxu3 }
  0xc3   :  { %v276_v35 = vpack.c.bf16 %v271_v29, %v270_v26  ;;  %v269_v36 = vadd.f32 %v261_v28, %v253_v30  ;;  %v235_v37 = vmul.f32 %v225_v57, %v219_v34 }
  0xc4   :  { %v248_v38 = vadd.f32 %v238_v58, %v234_v33 }
  0xc5   :  { %280 = vst [vmem:[#allocation10 + $0x10] sm:$0xff] %v276_v35  ;;  %v275_v39 = vpack.c.bf16 %v269_v36, %v268_v32  ;;  %v249_v41 = vadd.f32 %v239_v60, %v235_v37 }
  0xc6   :  { %v256_v42 = vmax.f32 %v248_v38, 0.0 }
  0xc7   :  { %279 = vst [vmem:[#allocation10 + $0x8] sm:$0xff] %v275_v39  ;;  %v257_v44 = vmax.f32 %v249_v41, 0.0 }
  0xc8   :  { %v272_v45 = vadd.f32 %v264_v40, %v256_v42 }
  0xc9   :  { %v273_v46 = vadd.f32 %v265_v43, %v257_v44 }
  0xcb   :  { %v277_v47 = vpack.c.bf16 %v273_v46, %v272_v45 }
  0xcd   :  { %281 = vst [vmem:[#allocation10 + $0x18] sm:$0xff] %v277_v47 }
  0xce   :  { %294 = dma.vmem_to_hbm [thread:$0]  %s287_s15, 512, %s289_s18, [#allocation4], %s537_s26, %s537_s26, %s538_s27  }
  0xcf   :  { %534 = dma.done.wait [#allocation4], 512  }
  0xd0   :  { %535 = vsyncadd [#allocation4], 4294966784 }
  0xd1   :  { %299 = vsyncpa [#allocation3], 1 }
  0xd2   :  { %300 = vsyncpa [#allocation6], 1 }
  0xd3   :  { %301 = vsyncpa [#allocation9], 1 }
  0xd4   :  { %302 = vsyncpa [#allocation4], 1 }

</bundles_post_ra>
